<compile_context>
chip_gen: v5e
topology: v5e:2x2
jax: 0.10.0
libtpu: 0.0.40
codegen_flags: <defaults>
</compile_context>

<pallas_src>
import functools

import jax
import jax.numpy as jnp
from jax.experimental import pallas as pl
from jax.experimental.pallas import tpu as pltpu

CLASS_W0 = 0.1   # class_weights[0]
CLASS_W1 = 0.9   # class_weights[1]
EPS = 1e-20
DICE_WEIGHT = 1.0  # `weight` arg of dice_loss (default 1.0)

_SUBLANES = 8
_LANES = 128
_MAX_BLOCK_ROWS = 4096  # 4096 x 128 f32 = 2 MiB per input per block


def _wdl_kernel(yt_ref, yp_ref, part_ref):
    """Per-block partial sums.

    part_ref block shape: (1, 4, 128) f32, rows are per-lane partial sums of
      [0] weighted-BCE term, [1] y_pred*y_true, [2] y_true, [3] y_pred.
    """
    yt = yt_ref[...]
    yp = yp_ref[...]

    # Keep the full two-term BCE (exact semantics even for soft labels).
    w = CLASS_W1 * yt + CLASS_W0 * (1.0 - yt)
    bce = yt * jnp.log(yp + EPS) + (1.0 - yt) * jnp.log(1.0 - yp + EPS)
    bce = -w * bce

    # Sublane-only reductions (keep lanes); the cross-lane reduce happens once
    # in the wrapper, which also improves accumulation accuracy.
    part_ref[0, 0:1, :] = jnp.sum(bce, axis=0, keepdims=True)
    part_ref[0, 1:2, :] = jnp.sum(yp * yt, axis=0, keepdims=True)
    part_ref[0, 2:3, :] = jnp.sum(yt, axis=0, keepdims=True)
    part_ref[0, 3:4, :] = jnp.sum(yp, axis=0, keepdims=True)


@jax.jit
def weighted_bce_dice_loss_pallas(y_true, y_pred):
    """Equivalent of WeightedDiceLoss.forward(y_true, y_pred) -> scalar f32."""
    yt = jnp.asarray(y_true, jnp.float32).reshape(-1)
    yp = jnp.asarray(y_pred, jnp.float32).reshape(-1)
    n = yt.shape[0]  # Python int at trace time

    # Choose block size: full (row-padded) array if small, else 4096-row tiles.
    n_rows = -(-n // _LANES)
    if n_rows <= _MAX_BLOCK_ROWS:
        block_rows = -(-n_rows // _SUBLANES) * _SUBLANES
    else:
        block_rows = _MAX_BLOCK_ROWS
    padded_rows = -(-n_rows // block_rows) * block_rows
    pad = padded_rows * _LANES - n

    # Only materialize padding when required (no-op copy avoided otherwise).
    # Zero padding contributes exactly 0 to all four partial sums in f32.
    if pad:
        yt = jnp.pad(yt, (0, pad))
        yp = jnp.pad(yp, (0, pad))
    yt2 = yt.reshape(padded_rows, _LANES)
    yp2 = yp.reshape(padded_rows, _LANES)

    num_blocks = padded_rows // block_rows
    in_spec = pl.BlockSpec((block_rows, _LANES), lambda i: (i, 0))

    partials = pl.pallas_call(
        _wdl_kernel,
        out_shape=jax.ShapeDtypeStruct((num_blocks, 4, _LANES), jnp.float32),
        grid_spec=pltpu.PrefetchScalarGridSpec(
            num_scalar_prefetch=0,
            grid=(num_blocks,),
            in_specs=[in_spec, in_spec],
            out_specs=pl.BlockSpec((1, 4, _LANES), lambda i: (i, 0, 0)),
        ),
        compiler_params=pltpu.CompilerParams(
            dimension_semantics=("parallel",),
        ),
    )(yt2, yp2)

    # Tiny final reduction + scalar combine in plain JAX.
    sums = jnp.sum(partials, axis=(0, 2))  # (4,)
    bce_mean = sums[0] / n
    intersection = sums[1]
    union = sums[2] + DICE_WEIGHT * sums[3]
    dice = 1.0 - (2.0 * intersection + EPS) / (union + EPS)
    return bce_mean + 0.5 * dice


def _reference(y_true, y_pred):
    yt = jnp.asarray(y_true, jnp.float32).reshape(-1)
    yp = jnp.asarray(y_pred, jnp.float32).reshape(-1)
    w = CLASS_W1 * yt + CLASS_W0 * (1.0 - yt)
    bce = yt * jnp.log(yp + EPS) + (1.0 - yt) * jnp.log(1.0 - yp + EPS)
    bce = jnp.mean(-w * bce)
    inter = jnp.sum(yp * yt)
    union = jnp.sum(yt) + DICE_WEIGHT * jnp.sum(yp)
    dice = 1.0 - (2.0 * inter + EPS) / (union + EPS)
    return bce + 0.5 * dice


if __name__ == "__main__":
    key = jax.random.PRNGKey(0)
    k1, k2, k3, k4 = jax.random.split(key, 4)

    # Aligned case (no padding path), NCHW-style mask / prediction tensors.
    shape = (2, 4, 16, 16)
    y_true = (jax.random.uniform(k1, shape) > 0.7).astype(jnp.float32)
    y_pred = jax.nn.sigmoid(jax.random.normal(k2, shape)).astype(jnp.float32)

    loss = jax.block_until_ready(weighted_bce_dice_loss_pallas(y_true, y_pred))
    ref = _reference(y_true, y_pred)
    assert jnp.allclose(loss, ref, rtol=1e-5, atol=1e-6), (loss, ref)

    # Unaligned case (exercises the zero-padding path).
    shape2 = (1, 1, 13, 17)
    y_true2 = (jax.random.uniform(k3, shape2) > 0.7).astype(jnp.float32)
    y_pred2 = jax.nn.sigmoid(jax.random.normal(k4, shape2)).astype(jnp.float32)

    loss2 = jax.block_until_ready(
        weighted_bce_dice_loss_pallas(y_true2, y_pred2))
    ref2 = _reference(y_true2, y_pred2)
    assert jnp.allclose(loss2, ref2, rtol=1e-5, atol=1e-6), (loss2, ref2)

    print("KERNEL_OK")
</pallas_src>

<mosaic_0001>
module attributes {stable_mosaic.version = 11 : i64} {
  func.func @_wdl_kernel(%arg0: i32, %arg1: memref<16x128xf32, #tpu.memory_space<vmem>>, %arg2: memref<16x128xf32, #tpu.memory_space<vmem>>, %arg3: memref<1x4x128xf32, #tpu.memory_space<vmem>>) attributes {dimension_semantics = [#tpu.dimension_semantics<parallel>], iteration_bounds = array<i64: 1>, scalar_prefetch = 0 : i64, scratch_operands = 0 : i64, tpu.core_type = #tpu.core_type<tc>, window_params = [{transform_indices = @transform_0, window_bounds = array<i64: 16, 128>}, {transform_indices = @transform_1, window_bounds = array<i64: 16, 128>}, {transform_indices = @transform_2, window_bounds = array<i64: 1, 4, 128>}]} {
    %c0 = arith.constant 0 : index
    %c0_0 = arith.constant 0 : index
    %0 = vector.load %arg1[%c0, %c0_0] : memref<16x128xf32, #tpu.memory_space<vmem>>, vector<16x128xf32>
    %c0_1 = arith.constant 0 : index
    %c0_2 = arith.constant 0 : index
    %1 = vector.load %arg2[%c0_1, %c0_2] : memref<16x128xf32, #tpu.memory_space<vmem>>, vector<16x128xf32>
    %cst = arith.constant 0.899999976 : f32
    %2 = vector.broadcast %cst : f32 to vector<16x128xf32>
    %3 = arith.mulf %2, %0 : vector<16x128xf32>
    %cst_3 = arith.constant 1.000000e+00 : f32
    %4 = vector.broadcast %cst_3 : f32 to vector<16x128xf32>
    %5 = arith.subf %4, %0 : vector<16x128xf32>
    %cst_4 = arith.constant 1.000000e-01 : f32
    %6 = vector.broadcast %cst_4 : f32 to vector<16x128xf32>
    %7 = arith.mulf %6, %5 : vector<16x128xf32>
    %8 = arith.addf %3, %7 : vector<16x128xf32>
    %cst_5 = arith.constant 9.99999968E-21 : f32
    %9 = vector.broadcast %cst_5 : f32 to vector<16x128xf32>
    %10 = arith.addf %1, %9 : vector<16x128xf32>
    %11 = math.log %10 : vector<16x128xf32>
    %12 = arith.mulf %0, %11 : vector<16x128xf32>
    %cst_6 = arith.constant 1.000000e+00 : f32
    %13 = vector.broadcast %cst_6 : f32 to vector<16x128xf32>
    %14 = arith.subf %13, %0 : vector<16x128xf32>
    %cst_7 = arith.constant 1.000000e+00 : f32
    %15 = vector.broadcast %cst_7 : f32 to vector<16x128xf32>
    %16 = arith.subf %15, %1 : vector<16x128xf32>
    %cst_8 = arith.constant 9.99999968E-21 : f32
    %17 = vector.broadcast %cst_8 : f32 to vector<16x128xf32>
    %18 = arith.addf %16, %17 : vector<16x128xf32>
    %19 = math.log %18 : vector<16x128xf32>
    %20 = arith.mulf %14, %19 : vector<16x128xf32>
    %21 = arith.addf %12, %20 : vector<16x128xf32>
    %cst_9 = arith.constant 0.000000e+00 : f32
    %22 = vector.broadcast %cst_9 : f32 to vector<16x128xf32>
    %23 = arith.subf %22, %8 : vector<16x128xf32>
    %24 = arith.mulf %23, %21 : vector<16x128xf32>
    %cst_10 = arith.constant dense<0.000000e+00> : vector<128xf32>
    %25 = vector.multi_reduction <add>, %24, %cst_10 [0] : vector<16x128xf32> to vector<128xf32>
    %26 = vector.shape_cast %25 : vector<128xf32> to vector<1x128xf32>
    %c0_11 = arith.constant 0 : index
    %c0_12 = arith.constant 0 : index
    %c0_13 = arith.constant 0 : index
    %27 = vector.load %arg3[%c0_11, %c0_12, %c0_13] : memref<1x4x128xf32, #tpu.memory_space<vmem>>, vector<1x1x128xf32>
    %28 = vector.shape_cast %27 : vector<1x1x128xf32> to vector<1x128xf32>
    %29 = vector.shape_cast %26 : vector<1x128xf32> to vector<1x1x128xf32>
    tpu.vector_store %arg3[%c0_11, %c0_12, %c0_13], %29 {strides = array<i32>} : memref<1x4x128xf32, #tpu.memory_space<vmem>>, vector<1x1x128xf32>,
    %30 = arith.mulf %1, %0 : vector<16x128xf32>
    %cst_14 = arith.constant dense<0.000000e+00> : vector<128xf32>
    %31 = vector.multi_reduction <add>, %30, %cst_14 [0] : vector<16x128xf32> to vector<128xf32>
    %32 = vector.shape_cast %31 : vector<128xf32> to vector<1x128xf32>
    %c0_15 = arith.constant 0 : index
    %c1 = arith.constant 1 : index
    %c0_16 = arith.constant 0 : index
    %33 = vector.load %arg3[%c0_15, %c1, %c0_16] : memref<1x4x128xf32, #tpu.memory_space<vmem>>, vector<1x1x128xf32>
    %34 = vector.shape_cast %33 : vector<1x1x128xf32> to vector<1x128xf32>
    %35 = vector.shape_cast %32 : vector<1x128xf32> to vector<1x1x128xf32>
    tpu.vector_store %arg3[%c0_15, %c1, %c0_16], %35 {strides = array<i32>} : memref<1x4x128xf32, #tpu.memory_space<vmem>>, vector<1x1x128xf32>,
    %cst_17 = arith.constant dense<0.000000e+00> : vector<128xf32>
    %36 = vector.multi_reduction <add>, %0, %cst_17 [0] : vector<16x128xf32> to vector<128xf32>
    %37 = vector.shape_cast %36 : vector<128xf32> to vector<1x128xf32>
    %c0_18 = arith.constant 0 : index
    %c2 = arith.constant 2 : index
    %c0_19 = arith.constant 0 : index
    %38 = vector.load %arg3[%c0_18, %c2, %c0_19] : memref<1x4x128xf32, #tpu.memory_space<vmem>>, vector<1x1x128xf32>
    %39 = vector.shape_cast %38 : vector<1x1x128xf32> to vector<1x128xf32>
    %40 = vector.shape_cast %37 : vector<1x128xf32> to vector<1x1x128xf32>
    tpu.vector_store %arg3[%c0_18, %c2, %c0_19], %40 {strides = array<i32>} : memref<1x4x128xf32, #tpu.memory_space<vmem>>, vector<1x1x128xf32>,
    %cst_20 = arith.constant dense<0.000000e+00> : vector<128xf32>
    %41 = vector.multi_reduction <add>, %1, %cst_20 [0] : vector<16x128xf32> to vector<128xf32>
    %42 = vector.shape_cast %41 : vector<128xf32> to vector<1x128xf32>
    %c0_21 = arith.constant 0 : index
    %c3 = arith.constant 3 : index
    %c0_22 = arith.constant 0 : index
    %43 = vector.load %arg3[%c0_21, %c3, %c0_22] : memref<1x4x128xf32, #tpu.memory_space<vmem>>, vector<1x1x128xf32>
    %44 = vector.shape_cast %43 : vector<1x1x128xf32> to vector<1x128xf32>
    %45 = vector.shape_cast %42 : vector<1x128xf32> to vector<1x1x128xf32>
    tpu.vector_store %arg3[%c0_21, %c3, %c0_22], %45 {strides = array<i32>} : memref<1x4x128xf32, #tpu.memory_space<vmem>>, vector<1x1x128xf32>,
    return
  }
  func.func @transform_0(%arg0: i32) -> (i32, i32) {
    %c0_i32 = arith.constant 0 : i32
    %c0_i32_0 = arith.constant 0 : i32
    return %arg0, %c0_i32 : i32, i32
  }
  func.func @transform_1(%arg0: i32) -> (i32, i32) {
    %c0_i32 = arith.constant 0 : i32
    %c0_i32_0 = arith.constant 0 : i32
    return %arg0, %c0_i32 : i32, i32
  }
  func.func @transform_2(%arg0: i32) -> (i32, i32, i32) {
    %c0_i32 = arith.constant 0 : i32
    %c0_i32_0 = arith.constant 0 : i32
    %c0_i32_1 = arith.constant 0 : i32
    return %arg0, %c0_i32, %c0_i32_0 : i32, i32, i32
  }
}

</mosaic_0001>

<bundles_post_ra>
// kernel: weighted_bce_dice_loss_pallas.1
= control target key start
LH: loop header
LB: loop body
LE: loop exit
PB: predicated region body
PF: predicated region fallthrough
CT: control target
= control target key end

     0   :  { %s132_s0 = inlined_call_operand.vmem [shape: f32[16,128], index: 0, kind: input, shape index: {}]   ;;  %s133_s1 = inlined_call_operand.vmem [shape: f32[16,128], index: 1, kind: input, shape index: {}]   ;;  %s134_s2 = inlined_call_operand.vmem [shape: f32[1,4,128], index: 2, kind: output, shape index: {}]  }
   0x1   :  { %v11_v0 = vld [vmem:[%s132_s0] sm:$0xff]  ;;  %v12_v2 = vld [vmem:[%s132_s0 + $0x8] sm:$0xff] }
   0x2   :  { %v13_v1 = vld [vmem:[%s133_s1] sm:$0xff]  ;;  %v14_v3 = vld [vmem:[%s133_s1 + $0x8] sm:$0xff]  ;;  %v17_v8 = vsub.f32 1.0, %v11_v0  ;;  %v65_v11 = vadd.f32 %v12_v2, %v11_v0  ;;  %v18_v12 = vsub.f32 1.0, %v12_v2  ;;  %v15_v19 = vmul.f32 0.9, %v11_v0 }
   0x3   :  { %v55_v4 = vmul.f32 %v13_v1, %v11_v0  ;;  %v23_v5 = vadd.f32 1e-20, %v13_v1  ;;  %v24_v6 = vadd.f32 1e-20, %v14_v3  ;;  %v31_v7 = vsub.f32 1.0, %v13_v1 }
   0x4   :  { %v32_v9 = vsub.f32 1.0, %v14_v3  ;;  %v56_v10 = vmul.f32 %v14_v3, %v12_v2  ;;  %v73_v14 = vadd.f32 %v14_v3, %v13_v1  ;;  %v66_v17 = vrot.slane %v65_v11, 4 }
   0x5   :  { %85 = vlog2.f32 %v23_v5  ;;  %v33_v13 = vadd.f32 1e-20, %v31_v7  ;;  %v19_v20 = vmul.f32 0.1, %v17_v8  ;;  %v16_v22 = vmul.f32 0.9, %v12_v2 }
   0x6   :  { %87 = vlog2.f32 %v24_v6  ;;  %v34_v15 = vadd.f32 1e-20, %v32_v9  ;;  %v57_v16 = vadd.f32 %v56_v10, %v55_v4  ;;  %v74_v18 = vrot.slane %v73_v14, 4 }
   0x7   :  { %89 = vlog2.f32 %v33_v13  ;;  %v20_v23 = vmul.f32 0.1, %v18_v12  ;;  %v67_v24 = vadd.f32 %v66_v17, %v65_v11  ;;  %v21_v31 = vadd.f32 %v19_v20, %v15_v19 }
   0x8   :  { %91 = vlog2.f32 %v34_v15  ;;  %v58_v21 = vrot.slane %v57_v16, 4  ;;  %v75_v25 = vadd.f32 %v74_v18, %v73_v14 }
   0x9   :  { %v68_v28 = vrot.slane %v67_v24, 2  ;;  %v22_v35 = vadd.f32 %v20_v23, %v16_v22  ;;  %v43_v48 = vsub.f32 0.0, %v21_v31 }
   0xa   :  { %v59_v26 = vadd.f32 %v58_v21, %v57_v16  ;;  %v76_v29 = vrot.slane %v75_v25, 2 }
   0xb   :  { %v86_v27 = vpop.eup %85  ;;  %v69_v37 = vadd.f32 %v68_v28, %v67_v24  ;;  %v44_v51 = vsub.f32 0.0, %v22_v35 }
   0xc   :  { %v88_v30 = vpop.eup %87  ;;  %v26_v32 = vmul.f32 0.6931472, %v86_v27  ;;  %v60_v33 = vrot.slane %v59_v26, 2  ;;  %v77_v38 = vadd.f32 %v76_v29, %v75_v25 }
   0xd   :  { %v90_v34 = vpop.eup %89  ;;  %v28_v36 = vmul.f32 0.6931472, %v88_v30  ;;  %v70_v45 = vrot.slane %v69_v37, 1 }
   0xe   :  { %v92_v39 = vpop.eup %91  ;;  %v29_v40 = vmul.f32 %v26_v32, %v11_v0  ;;  %v36_v41 = vmul.f32 0.6931472, %v90_v34  ;;  %v61_v42 = vadd.f32 %v60_v33, %v59_v26  ;;  %v78_v46 = vrot.slane %v77_v38, 1 }
   0xf   :  { %v30_v43 = vmul.f32 %v28_v36, %v12_v2  ;;  %v38_v44 = vmul.f32 0.6931472, %v92_v39  ;;  %v71_v52 = vadd.f32 %v70_v45, %v69_v37 }
  0x10   :  { %v39_v47 = vmul.f32 %v36_v41, %v17_v8  ;;  %v62_v49 = vrot.slane %v61_v42, 1  ;;  %v79_v53 = vadd.f32 %v78_v46, %v77_v38 }
  0x11   :  { %v40_v50 = vmul.f32 %v38_v44, %v18_v12  ;;  %72 = vst [vmem:[%s134_s2 + $0x2] sm:$0x1] %v71_v52 }
  0x12   :  { %v41_v54 = vadd.f32 %v39_v47, %v29_v40  ;;  %v63_v55 = vadd.f32 %v62_v49, %v61_v42  ;;  %80 = vst [vmem:[%s134_s2 + $0x3] sm:$0x1] %v79_v53 }
  0x13   :  { %v42_v56 = vadd.f32 %v40_v50, %v30_v43 }
  0x14   :  { %v45_v57 = vmul.f32 %v43_v48, %v41_v54  ;;  %64 = vst [vmem:[%s134_s2 + $0x1] sm:$0x1] %v63_v55 }
  0x15   :  { %v46_v58 = vmul.f32 %v44_v51, %v42_v56 }
  0x17   :  { %v47_v59 = vadd.f32 %v46_v58, %v45_v57 }
  0x19   :  { %v48_v60 = vrot.slane %v47_v59, 4 }
  0x1b   :  { %v49_v61 = vadd.f32 %v48_v60, %v47_v59 }
  0x1d   :  { %v50_v62 = vrot.slane %v49_v61, 2 }
  0x1f   :  { %v51_v63 = vadd.f32 %v50_v62, %v49_v61 }
  0x21   :  { %v52_v0 = vrot.slane %v51_v63, 1 }
  0x23   :  { %v53_v1 = vadd.f32 %v52_v0, %v51_v63 }
  0x25   :  { %54 = vst [vmem:[%s134_s2] sm:$0x1] %v53_v1 }

</bundles_post_ra>
